<compile_context>
chip_gen: v6e
topology: v6e:2x2x1
jax: 0.10.0
libtpu: 0.0.40
codegen_flags: <defaults>
</compile_context>

<pallas_src>
import functools

import jax
import jax.numpy as jnp
from jax.experimental import pallas as pl
from jax.experimental.pallas import tpu as pltpu

_LANE = 128


def _layernorm_kernel(x_ref, w_ref, b_ref, o_ref, *, eps, inv_d):
    # x_ref / o_ref: (TILE_BM, D, TILE_N); w_ref / b_ref: (1, D, 1)
    x = x_ref[...].astype(jnp.float32)
    # One-pass statistics with f32 accumulation: removes the `centered` /
    # `centered*centered` full-tile temporaries and one full-tile sweep.
    mean = jnp.sum(x, axis=1, keepdims=True) * inv_d            # sublane reduce over D
    mean_sq = jnp.sum(x * x, axis=1, keepdims=True) * inv_d
    var = jnp.maximum(mean_sq - mean * mean, 0.0)               # clamp for robustness
    inv = jax.lax.rsqrt(var + eps)                              # EUP rsqrt
    w = w_ref[...].astype(jnp.float32)
    b = b_ref[...].astype(jnp.float32)
    o_ref[...] = ((x - mean) * inv * w + b).astype(o_ref.dtype)


def _vmem_capacity_bytes():
    try:
        return int(pltpu.get_tpu_info().vmem_capacity_bytes)
    except Exception:  # conservative fallback = smallest generation (v7x per-TC VMEM)
        return 64 << 20


def modern_tcn_layernorm(x, weight, bias, *, eps=1e-5, tile_n=None, tile_bm=None,
                         block_budget_bytes=None):
    """LayerNorm over the D (channel) axis of x: (B, M, D, N) -> (B, M, D, N)."""
    B, M, D, N = x.shape
    BM = B * M
    x3 = x.reshape(BM, D, N)             # free reshape: no transpose, no pad, no slice

    vmem_cap = _vmem_capacity_bytes()
    if block_budget_bytes is None:
        # ~4.5 MiB f32 blocks on v7x (64 MiB VMEM), ~9 MiB on v5e/v6e (128 MiB):
        # leaves room for double-buffered in/out blocks plus the kernel's f32 temps.
        block_budget_bytes = max(1 << 20, vmem_cap // 14)
    budget_elems = max(8 * _LANE, block_budget_bytes // 4)      # f32 elements / block

    if tile_n is None:
        if D * N <= budget_elems:
            tile_n = N                    # full last dim: fully contiguous HBM DMAs
        else:
            q = max(1, budget_elems // (D * _LANE))
            tile_n = min(pl.cdiv(N, _LANE), q) * _LANE          # lane-dense split of N
    elif tile_n != N and tile_n % _LANE != 0:
        raise ValueError("tile_n must be the full N or a multiple of 128")

    if tile_bm is None:
        tile_bm = max(1, min(BM, budget_elems // (D * tile_n)))
        # Ensure >=2 blocks when possible so v7x's two TensorCores both get work
        # (no-op on single-core v5e/v6e).
        if pl.cdiv(BM, tile_bm) * pl.cdiv(N, tile_n) == 1 and BM >= 2:
            tile_bm = pl.cdiv(BM, 2)

    # cdiv grids: ragged edge blocks are masked by Pallas — no silent tail drop for
    # non-dividing tiles, and no extra pad/slice HBM passes when N % 128 != 0.
    grid = (pl.cdiv(BM, tile_bm), pl.cdiv(N, tile_n))

    block_in_bytes = tile_bm * D * tile_n * x.dtype.itemsize
    block_f32_bytes = tile_bm * D * tile_n * 4
    # 2x double-buffered in + out blocks at input dtype, ~4 f32-tile compiler temps,
    # plus slack for weight/bias and Mosaic scratch; capped per generation.
    footprint = 4 * block_in_bytes + 4 * block_f32_bytes + (1 << 20)
    generation_cap = min(int(0.8 * vmem_cap), 100 << 20)   # ~51 MiB v7x, 100 MiB v5e/v6e
    vmem_limit = int(min(max(footprint, 32 << 20), generation_cap))

    w3 = weight.reshape(1, D, 1)
    b3 = bias.reshape(1, D, 1)

    kernel = functools.partial(_layernorm_kernel, eps=eps, inv_d=1.0 / D)
    y3 = pl.pallas_call(
        kernel,
        out_shape=jax.ShapeDtypeStruct((BM, D, N), x.dtype),
        grid_spec=pltpu.PrefetchScalarGridSpec(
            num_scalar_prefetch=0,
            grid=grid,
            in_specs=[
                pl.BlockSpec((tile_bm, D, tile_n), lambda i, j: (i, 0, j)),
                pl.BlockSpec((1, D, 1), lambda i, j: (0, 0, 0)),
                pl.BlockSpec((1, D, 1), lambda i, j: (0, 0, 0)),
            ],
            out_specs=pl.BlockSpec((tile_bm, D, tile_n), lambda i, j: (i, 0, j)),
        ),
        compiler_params=pltpu.CompilerParams(
            dimension_semantics=("parallel", "parallel"),
            vmem_limit_bytes=vmem_limit,
        ),
    )(x3, w3, b3)

    return y3.reshape(B, M, D, N)


def reference_layernorm(x, weight, bias, eps=1e-5):
    # Pure-JAX reference mirroring the PyTorch module (normalize over D), two-pass.
    xf = x.astype(jnp.float32)
    mean = jnp.mean(xf, axis=2, keepdims=True)
    var = jnp.mean((xf - mean) ** 2, axis=2, keepdims=True)
    w = weight.reshape(1, 1, -1, 1).astype(jnp.float32)
    b = bias.reshape(1, 1, -1, 1).astype(jnp.float32)
    y = (xf - mean) / jnp.sqrt(var + eps) * w + b
    return y.astype(x.dtype)


if __name__ == "__main__":
    key = jax.random.PRNGKey(0)
    kx, kw, kb = jax.random.split(key, 3)

    B, M, D, N = 2, 4, 32, 16
    x = jax.random.normal(kx, (B, M, D, N), dtype=jnp.float32)

    # nn.LayerNorm(D) default init is weight=1, bias=0; perturb deterministically
    # so the affine path is exercised.
    weight = jnp.ones((D,), jnp.float32) + 0.1 * jax.random.normal(kw, (D,), jnp.float32)
    bias = 0.1 * jax.random.normal(kb, (D,), jnp.float32)

    out = jax.block_until_ready(modern_tcn_layernorm(x, weight, bias))
    ref = reference_layernorm(x, weight, bias)
    assert out.shape == (B, M, D, N)
    assert jnp.allclose(out, ref, atol=2e-5, rtol=2e-5), "mismatch vs reference"

    # Ragged-edge path: manual tiles that do NOT divide BM / N exercise the cdiv
    # grid's masked edge blocks (the path that replaced jnp.pad / slicing).
    B2, M2, D2, N2 = 1, 6, 16, 48
    x2 = jax.random.normal(jax.random.PRNGKey(1), (B2, M2, D2, N2), dtype=jnp.float32)
    w2 = jnp.ones((D2,), jnp.float32)
    b2 = jnp.zeros((D2,), jnp.float32)
    out2 = jax.block_until_ready(
        modern_tcn_layernorm(x2, w2, b2, tile_bm=4, tile_n=_LANE))
    ref2 = reference_layernorm(x2, w2, b2)
    assert out2.shape == (B2, M2, D2, N2)
    assert jnp.allclose(out2, ref2, atol=2e-5, rtol=2e-5), "mismatch vs reference (ragged)"

    print("KERNEL_OK")
</pallas_src>

<mosaic_0001>
module attributes {stable_mosaic.version = 11 : i64} {
  func.func @_layernorm_kernel(%arg0: i32, %arg1: i32, %arg2: memref<4x32x16xf32, #tpu.memory_space<vmem>>, %arg3: memref<1x32x1xf32, #tpu.memory_space<vmem>>, %arg4: memref<1x32x1xf32, #tpu.memory_space<vmem>>, %arg5: memref<4x32x16xf32, #tpu.memory_space<vmem>>) attributes {dimension_semantics = [#tpu.dimension_semantics<parallel>, #tpu.dimension_semantics<parallel>], iteration_bounds = array<i64: 2, 1>, scalar_prefetch = 0 : i64, scratch_operands = 0 : i64, tpu.core_type = #tpu.core_type<tc>, window_params = [{transform_indices = @transform_0, window_bounds = array<i64: 4, 32, 16>}, {pipeline_mode = #tpu.pipeline_mode<synchronous>, transform_indices = @transform_1, window_bounds = array<i64: 1, 32, 1>}, {pipeline_mode = #tpu.pipeline_mode<synchronous>, transform_indices = @transform_2, window_bounds = array<i64: 1, 32, 1>}, {transform_indices = @transform_3, window_bounds = array<i64: 4, 32, 16>}]} {
    %c0 = arith.constant 0 : index
    %c0_0 = arith.constant 0 : index
    %c0_1 = arith.constant 0 : index
    %0 = vector.load %arg2[%c0, %c0_0, %c0_1] : memref<4x32x16xf32, #tpu.memory_space<vmem>>, vector<4x32x16xf32>
    %cst = arith.constant dense<0.000000e+00> : vector<4x16xf32>
    %1 = vector.multi_reduction <add>, %0, %cst [1] : vector<4x32x16xf32> to vector<4x16xf32>
    %2 = vector.shape_cast %1 : vector<4x16xf32> to vector<4x1x16xf32>
    %cst_2 = arith.constant 3.125000e-02 : f32
    %3 = vector.broadcast %cst_2 : f32 to vector<4x1x16xf32>
    %4 = arith.mulf %2, %3 : vector<4x1x16xf32>
    %5 = arith.mulf %0, %0 : vector<4x32x16xf32>
    %cst_3 = arith.constant dense<0.000000e+00> : vector<4x16xf32>
    %6 = vector.multi_reduction <add>, %5, %cst_3 [1] : vector<4x32x16xf32> to vector<4x16xf32>
    %7 = vector.shape_cast %6 : vector<4x16xf32> to vector<4x1x16xf32>
    %cst_4 = arith.constant 3.125000e-02 : f32
    %8 = vector.broadcast %cst_4 : f32 to vector<4x1x16xf32>
    %9 = arith.mulf %7, %8 : vector<4x1x16xf32>
    %10 = arith.mulf %4, %4 : vector<4x1x16xf32>
    %11 = arith.subf %9, %10 : vector<4x1x16xf32>
    %cst_5 = arith.constant 0.000000e+00 : f32
    %12 = vector.broadcast %cst_5 : f32 to vector<4x1x16xf32>
    %13 = arith.maximumf %11, %12 : vector<4x1x16xf32>
    %cst_6 = arith.constant 9.99999974E-6 : f32
    %14 = vector.broadcast %cst_6 : f32 to vector<4x1x16xf32>
    %15 = arith.addf %13, %14 : vector<4x1x16xf32>
    %16 = math.rsqrt %15 : vector<4x1x16xf32>
    %c0_7 = arith.constant 0 : index
    %c0_8 = arith.constant 0 : index
    %c0_9 = arith.constant 0 : index
    %17 = vector.load %arg3[%c0_7, %c0_8, %c0_9] : memref<1x32x1xf32, #tpu.memory_space<vmem>>, vector<1x32x1xf32>
    %c0_10 = arith.constant 0 : index
    %c0_11 = arith.constant 0 : index
    %c0_12 = arith.constant 0 : index
    %18 = vector.load %arg4[%c0_10, %c0_11, %c0_12] : memref<1x32x1xf32, #tpu.memory_space<vmem>>, vector<1x32x1xf32>
    %19 = vector.broadcast %4 : vector<4x1x16xf32> to vector<4x32x16xf32>
    %20 = arith.subf %0, %19 : vector<4x32x16xf32>
    %21 = vector.broadcast %16 : vector<4x1x16xf32> to vector<4x32x16xf32>
    %22 = arith.mulf %20, %21 : vector<4x32x16xf32>
    %23 = vector.broadcast %17 : vector<1x32x1xf32> to vector<4x32x16xf32>
    %24 = arith.mulf %22, %23 : vector<4x32x16xf32>
    %25 = vector.broadcast %18 : vector<1x32x1xf32> to vector<4x32x16xf32>
    %26 = arith.addf %24, %25 : vector<4x32x16xf32>
    %c0_13 = arith.constant 0 : index
    %c0_14 = arith.constant 0 : index
    %c0_15 = arith.constant 0 : index
    %27 = vector.load %arg5[%c0_13, %c0_14, %c0_15] : memref<4x32x16xf32, #tpu.memory_space<vmem>>, vector<4x32x16xf32>
    tpu.vector_store %arg5[%c0_13, %c0_14, %c0_15], %26 {strides = array<i32>} : memref<4x32x16xf32, #tpu.memory_space<vmem>>, vector<4x32x16xf32>,
    return
  }
  func.func @transform_0(%arg0: i32, %arg1: i32) -> (i32, i32, i32) {
    %c0_i32 = arith.constant 0 : i32
    %c0_i32_0 = arith.constant 0 : i32
    return %arg0, %c0_i32, %arg1 : i32, i32, i32
  }
  func.func @transform_1(%arg0: i32, %arg1: i32) -> (i32, i32, i32) {
    %c0_i32 = arith.constant 0 : i32
    %c0_i32_0 = arith.constant 0 : i32
    %c0_i32_1 = arith.constant 0 : i32
    %c0_i32_2 = arith.constant 0 : i32
    return %c0_i32, %c0_i32_0, %c0_i32_1 : i32, i32, i32
  }
  func.func @transform_2(%arg0: i32, %arg1: i32) -> (i32, i32, i32) {
    %c0_i32 = arith.constant 0 : i32
    %c0_i32_0 = arith.constant 0 : i32
    %c0_i32_1 = arith.constant 0 : i32
    %c0_i32_2 = arith.constant 0 : i32
    return %c0_i32, %c0_i32_0, %c0_i32_1 : i32, i32, i32
  }
  func.func @transform_3(%arg0: i32, %arg1: i32) -> (i32, i32, i32) {
    %c0_i32 = arith.constant 0 : i32
    %c0_i32_0 = arith.constant 0 : i32
    return %arg0, %c0_i32, %arg1 : i32, i32, i32
  }
}

</mosaic_0001>

<bundles_post_ra>
// kernel: tpu_custom_call.1
= control target key start
LH: loop header
LB: loop body
LE: loop exit
PB: predicated region body
PF: predicated region fallthrough
CT: control target
= control target key end

     0   :  { %s685_s12 = smov 0   ;;  %s687_s13 = smov 0   ;;  %s970_s0 = inlined_call_operand.vmem [shape: f32[8,32,16], index: 0, kind: input, shape index: {}]   ;;  %s971_s1 = inlined_call_operand.vmem [shape: f32[1,32,1], index: 1, kind: input, shape index: {}]   ;;  %s972_s2 = inlined_call_operand.vmem [shape: f32[1,32,1], index: 2, kind: input, shape index: {}]   ;;  %s973_s3 = inlined_call_operand.vmem [shape: f32[8,32,16], index: 3, kind: output, shape index: {}]  }
   0x1   :  { %s689_s14 = smov 0  }
   0x2 LB: > { %s25_s15 = sadd.s32 1, %s658_s13  ;;  %p594_p0 = scmp.ge.s32.totalorder %s662_s14, 1  ;;  %s662_s14 = sphi %s689_s14, %s13_s14   ;;  %s658_s13 = sphi %s687_s13, %s975_s13   ;;  %s654_s12 = sphi %s685_s12, %s974_s12  }
   0x3   : > { %p27_p1 = scmp.ge.s32.totalorder %s25_s15, 2  ;;  %p158_p2 = scmp.lt.s32.totalorder %s662_s14, 3 }
   0x5   : > { %s977_s15 = smov (%p27_p1, %s25_s15), 0  ;;  %p159_p3 = pnand %p594_p0, %p158_p2 }
   0x6   : > { %s595_s5 = sshll.u32 (!%p159_p3), %s654_s12, 2 }
   0x7   : > { %162 = sbr.rel (%p159_p3) target bundleno = 156 (0x9c), region = 32  ;;  %p191_p4 = scmp.lt.s32.totalorder (!%p159_p3), %s595_s5, 7 }
   0xc   : > { %v377_v0 = vld [vmem:[%s971_s1 + $0x10] sm:$0xff]  ;;  %v375_v1 = vld [vmem:[%s971_s1] sm:$0xff]  ;;  %v664_v2 = vmov 0   ;;  %v378_v3 = vld [vmem:[%s971_s1 + $0x18] sm:$0xff]  ;;  %s979_s5 = smov (!%p191_p4, %s595_s5), 7  ;;  %vm226_vm0 = vcmask 130048  }
   0xd   : > { %631 = vset.pattern.permute.xlu1 %v664_v2  ;;  %630 = vset.pattern.permute.xlu0 %v664_v2  ;;  %v376_v4 = vld [vmem:[%s971_s1 + $0x8] sm:$0xff]  ;;  %v379_v6 = vld [vmem:[%s972_s2] sm:$0xff]  ;;  %v382_v7 = vld [vmem:[%s972_s2 + $0x18] sm:$0xff]  ;;  %s603_s6 = sshll.u32 %s979_s5, 5 }
   0xe   : > { %427 = vperm.xlu1 %631, %v377_v0   ;;  %417 = vperm.xlu0 %630, %v375_v1   ;;  %v380_v5 = vld [vmem:[%s972_s2 + $0x8] sm:$0xff]  ;;  %v381_v8 = vld [vmem:[%s972_s2 + $0x10] sm:$0xff]  ;;  %s738_s9 = scalar_lea.vmem %s970_s0, %s603_s6  ;;  %s923_s12 = scalar_lea.vmem %s973_s3, %s603_s6 }
   0xf   : > { %v741_v9 = vld [vmem:[%s738_s9] sm:$0xff]  ;;  %v744_v10 = vld [vmem:[%s738_s9 + $0x8] sm:$0xff]  ;;  %v757_v15 = vld [vmem:[%s738_s9 + $0x10] sm:$0xff] }
  0x10   : > { %v747_v11 = vld [vmem:[%s738_s9 + $0x20] sm:$0xff]  ;;  %v750_v12 = vld [vmem:[%s738_s9 + $0x28] sm:$0xff]  ;;  %v227_v13 = vsel %vm226_vm0, %v741_v9, 0.0  ;;  %v228_v14 = vsel %vm226_vm0, %v744_v10, 0.0  ;;  %v764_v18 = vld [vmem:[%s738_s9 + $0x30] sm:$0xff]  ;;  %v230_v24 = vsel %vm226_vm0, %v757_v15, 0.0  ;;  %v283_v30 = vmul.f32 %v741_v9, %v741_v9 }
  0x11   : > { %v240_v16 = vsel %vm226_vm0, %v747_v11, 0.0  ;;  %v241_v17 = vsel %vm226_vm0, %v750_v12, 0.0  ;;  %v767_v19 = vld [vmem:[%s738_s9 + $0x18] sm:$0xff]  ;;  %v773_v21 = vld [vmem:[%s738_s9 + $0x40] sm:$0xff]  ;;  %v229_v22 = vadd.f32 %v228_v14, %v227_v13  ;;  %v776_v23 = vld [vmem:[%s738_s9 + $0x48] sm:$0xff]  ;;  %v243_v29 = vsel %vm226_vm0, %v764_v18, 0.0 }
  0x12   : > { %432 = vperm.xlu1 %631, %v378_v3   ;;  %422 = vperm.xlu0 %630, %v376_v4   ;;  %v770_v20 = vld [vmem:[%s738_s9 + $0x38] sm:$0xff]  ;;  %v242_v25 = vadd.f32 %v241_v17, %v240_v16  ;;  %v781_v26 = vld [vmem:[%s738_s9 + $0x50] sm:$0xff]  ;;  %v787_v28 = vld [vmem:[%s738_s9 + $0x60] sm:$0xff]  ;;  %v232_v32 = vsel %vm226_vm0, %v767_v19, 0.0  ;;  %v253_v34 = vsel %vm226_vm0, %v773_v21, 0.0  ;;  %v284_v35 = vmul.f32 %v744_v10, %v744_v10 }
  0x13   : > { %v784_v27 = vld [vmem:[%s738_s9 + $0x58] sm:$0xff]  ;;  %v794_v31 = vld [vmem:[%s738_s9 + $0x68] sm:$0xff]  ;;  %v245_v33 = vsel %vm226_vm0, %v770_v20, 0.0  ;;  %v231_v36 = vadd.f32 %v230_v24, %v229_v22  ;;  %v254_v37 = vsel %vm226_vm0, %v776_v23, 0.0  ;;  %v287_v38 = vmul.f32 %v747_v11, %v747_v11  ;;  %v817_v44 = vld [vmem:[%s738_s9 + $0x70] sm:$0xff] }
  0x14   : > { %v288_v39 = vmul.f32 %v750_v12, %v750_v12  ;;  %v244_v40 = vadd.f32 %v243_v29, %v242_v25  ;;  %v256_v41 = vsel %vm226_vm0, %v781_v26, 0.0  ;;  %v258_v42 = vsel %vm226_vm0, %v784_v27, 0.0  ;;  %v838_v57 = vld [vmem:[%s738_s9 + $0x78] sm:$0xff] }
  0x15   : > { %v266_v43 = vsel %vm226_vm0, %v787_v28, 0.0  ;;  %v267_v45 = vsel %vm226_vm0, %v794_v31, 0.0  ;;  %v291_v46 = vmul.f32 %v773_v21, %v773_v21  ;;  %v292_v47 = vmul.f32 %v776_v23, %v776_v23 }
  0x16   : > { %458 = vperm.xlu1 %631, %v380_v5   ;;  %453 = vperm.xlu0 %630, %v379_v6   ;;  %v299_v48 = vsel %vm226_vm0, %v283_v30, 0.0  ;;  %v285_v49 = vmul.f32 %v757_v15, %v757_v15  ;;  %v295_v50 = vmul.f32 %v787_v28, %v787_v28  ;;  %v296_v51 = vmul.f32 %v794_v31, %v794_v31 }
  0x17   : > { %v300_v52 = vsel %vm226_vm0, %v284_v35, 0.0  ;;  %v255_v53 = vadd.f32 %v254_v37, %v253_v34  ;;  %v289_v54 = vmul.f32 %v764_v18, %v764_v18  ;;  %v312_v55 = vsel %vm226_vm0, %v287_v38, 0.0 }
  0x18   : > { %v313_v56 = vsel %vm226_vm0, %v288_v39, 0.0  ;;  %v268_v58 = vadd.f32 %v267_v45, %v266_v43  ;;  %v269_v59 = vsel %vm226_vm0, %v817_v44, 0.0  ;;  %v286_v60 = vmul.f32 %v767_v19, %v767_v19 }
  0x19   : > { %v293_v61 = vmul.f32 %v781_v26, %v781_v26  ;;  %v297_v62 = vmul.f32 %v817_v44, %v817_v44  ;;  %v301_v63 = vadd.f32 %v300_v52, %v299_v48  ;;  %v325_v0 = vsel %vm226_vm0, %v291_v46, 0.0 }
  0x1a   : > { %468 = vperm.xlu1 %631, %v382_v7   ;;  %463 = vperm.xlu0 %630, %v381_v8   ;;  %v326_v1 = vsel %vm226_vm0, %v292_v47, 0.0  ;;  %v302_v2 = vsel %vm226_vm0, %v285_v49, 0.0  ;;  %v314_v3 = vadd.f32 %v313_v56, %v312_v55  ;;  %v338_v4 = vsel %vm226_vm0, %v295_v50, 0.0 }
  0x1b   : > { %v339_v5 = vsel %vm226_vm0, %v296_v51, 0.0  ;;  %v233_v6 = vadd.f32 %v232_v32, %v231_v36  ;;  %v271_v7 = vsel %vm226_vm0, %v838_v57, 0.0  ;;  %v290_v8 = vmul.f32 %v770_v20, %v770_v20 }
  0x1c   : > { %v315_v13 = vsel %vm226_vm0, %v289_v54, 0.0  ;;  %v246_v14 = vadd.f32 %v245_v33, %v244_v40  ;;  %v257_v16 = vadd.f32 %v256_v41, %v255_v53  ;;  %v270_v17 = vadd.f32 %v269_v59, %v268_v58 }
  0x1d   : > { %v327_v22 = vadd.f32 %v326_v1, %v325_v0  ;;  %v294_v24 = vmul.f32 %v784_v27, %v784_v27  ;;  %v303_v25 = vadd.f32 %v302_v2, %v301_v63  ;;  %v328_v29 = vsel %vm226_vm0, %v293_v61, 0.0 }
  0x1e   : > { %v340_v30 = vadd.f32 %v339_v5, %v338_v4  ;;  %v298_v32 = vmul.f32 %v838_v57, %v838_v57  ;;  %v304_v34 = vsel %vm226_vm0, %v286_v60, 0.0  ;;  %v316_v35 = vadd.f32 %v315_v13, %v314_v3 }
  0x1f   : > { %v341_v36 = vsel %vm226_vm0, %v297_v62, 0.0  ;;  %v317_v33 = vsel %vm226_vm0, %v290_v8, 0.0  ;;  %v234_v37 = vrot.slane %v233_v6, 4  ;;  %v259_v38 = vadd.f32 %v258_v42, %v257_v16 }
  0x20   : > { %v329_v39 = vadd.f32 %v328_v29, %v327_v22  ;;  %v272_v40 = vadd.f32 %v271_v7, %v270_v17  ;;  %v305_v41 = vadd.f32 %v304_v34, %v303_v25  ;;  %v330_v43 = vsel %vm226_vm0, %v294_v24, 0.0 }
  0x21   : > { %v342_v45 = vadd.f32 %v341_v36, %v340_v30  ;;  %v247_v46 = vrot.slane %v246_v14, 4  ;;  %v318_v47 = vadd.f32 %v317_v33, %v316_v35  ;;  %v343_v48 = vsel %vm226_vm0, %v298_v32, 0.0 }
  0x22   : > { %v260_v49 = vrot.slane %v259_v38, 4  ;;  %v331_v50 = vadd.f32 %v330_v43, %v329_v39  ;;  %v235_v51 = vadd.f32 %v234_v37, %v233_v6  ;;  %v273_v52 = vrot.slane %v272_v40, 4 }
  0x23   : > { %v306_v53 = vrot.slane %v305_v41, 4  ;;  %v344_v54 = vadd.f32 %v343_v48, %v342_v45  ;;  %v248_v55 = vadd.f32 %v247_v46, %v246_v14  ;;  %v319_v56 = vrot.slane %v318_v47, 4 }
  0x24   : > { %v261_v58 = vadd.f32 %v260_v49, %v259_v38  ;;  %v332_v42 = vrot.slane %v331_v50, 4  ;;  %v236_v59 = vrot.slane %v235_v51, 2  ;;  %v274_v60 = vadd.f32 %v273_v52, %v272_v40 }
  0x25   : > { %v307_v61 = vadd.f32 %v306_v53, %v305_v41  ;;  %v345_v62 = vrot.slane %v344_v54, 4  ;;  %v249_v63 = vrot.slane %v248_v55, 2  ;;  %v320_v0 = vadd.f32 %v319_v56, %v318_v47 }
  0x26   : > { %v262_v1 = vrot.slane %v261_v58, 2  ;;  %v333_v2 = vadd.f32 %v332_v42, %v331_v50  ;;  %v237_v3 = vadd.f32 %v236_v59, %v235_v51  ;;  %v275_v4 = vrot.slane %v274_v60, 2 }
  0x27   : > { %v308_v5 = vrot.slane %v307_v61, 2  ;;  %v346_v7 = vadd.f32 %v345_v62, %v344_v54  ;;  %v250_v6 = vadd.f32 %v249_v63, %v248_v55  ;;  %v321_v8 = vrot.slane %v320_v0, 2 }
  0x28   : > { %v263_v13 = vadd.f32 %v262_v1, %v261_v58  ;;  %v334_v16 = vrot.slane %v333_v2, 2  ;;  %v238_v14 = vrot.slane %v237_v3, 1  ;;  %v276_v17 = vadd.f32 %v275_v4, %v274_v60 }
  0x29   : > { %v309_v22 = vadd.f32 %v308_v5, %v307_v61  ;;  %v347_v24 = vrot.slane %v346_v7, 2  ;;  %v251_v25 = vrot.slane %v250_v6, 1  ;;  %v322_v29 = vadd.f32 %v321_v8, %v320_v0 }
  0x2a   : > { %v264_v30 = vrot.slane %v263_v13, 1  ;;  %v335_v32 = vadd.f32 %v334_v16, %v333_v2  ;;  %v239_v34 = vadd.f32 %v238_v14, %v237_v3  ;;  %v277_v35 = vrot.slane %v276_v17, 1 }
  0x2b   : > { %v310_v36 = vrot.slane %v309_v22, 1  ;;  %v348_v33 = vadd.f32 %v347_v24, %v346_v7  ;;  %v252_v37 = vadd.f32 %v251_v25, %v250_v6  ;;  %v323_v38 = vrot.slane %v322_v29, 1 }
  0x2c   : > { %v265_v39 = vadd.f32 %v264_v30, %v263_v13  ;;  %v336_v40 = vrot.slane %v335_v32, 1  ;;  %v278_v41 = vadd.f32 %v277_v35, %v276_v17  ;;  %v868_v43 = vmul.f32 0.03125, %v239_v34 }
  0x2d   : > { %v311_v45 = vadd.f32 %v310_v36, %v309_v22  ;;  %v349_v46 = vrot.slane %v348_v33, 1  ;;  %v870_v47 = vmul.f32 0.03125, %v252_v37  ;;  %v324_v48 = vadd.f32 %v323_v38, %v322_v29 }
  0x2e   : > { %v872_v49 = vmul.f32 0.03125, %v265_v39  ;;  %v337_v50 = vadd.f32 %v336_v40, %v335_v32  ;;  %v874_v51 = vmul.f32 0.03125, %v278_v41  ;;  %v355_v54 = vmul.f32 %v868_v43, %v868_v43 }
  0x2f   : > { %v350_v52 = vadd.f32 %v349_v46, %v348_v33  ;;  %v351_v53 = vmul.f32 0.03125, %v311_v45  ;;  %v352_v55 = vmul.f32 0.03125, %v324_v48  ;;  %v356_v56 = vmul.f32 %v870_v47, %v870_v47 }
  0x30   : > { %v353_v58 = vmul.f32 0.03125, %v337_v50  ;;  %v357_v42 = vmul.f32 %v872_v49, %v872_v49  ;;  %v358_v60 = vmul.f32 %v874_v51, %v874_v51  ;;  %v384_v13 = vsub.f32 %v744_v10, %v868_v43 }
  0x31   : > { %v354_v59 = vmul.f32 0.03125, %v350_v52  ;;  %v359_v61 = vsub.f32 %v351_v53, %v355_v54  ;;  %v360_v62 = vsub.f32 %v352_v55, %v356_v56  ;;  %v388_v16 = vsub.f32 %v750_v12, %v870_v47 }
  0x32   : > { %v361_v63 = vsub.f32 %v353_v58, %v357_v42  ;;  %v383_v24 = vsub.f32 %v741_v9, %v868_v43  ;;  %v387_v25 = vsub.f32 %v747_v11, %v870_v47  ;;  %v392_v30 = vsub.f32 %v776_v23, %v872_v49 }
  0x33   : > { %v362_v0 = vsub.f32 %v354_v59, %v358_v60  ;;  %v363_v1 = vmax.f32 %v359_v61, 0.0  ;;  %v364_v2 = vmax.f32 %v360_v62, 0.0  ;;  %v386_v10 = vsub.f32 %v767_v19, %v868_v43 }
  0x34   : > { %v365_v3 = vmax.f32 %v361_v63, 0.0  ;;  %v385_v12 = vsub.f32 %v757_v15, %v868_v43  ;;  %v391_v32 = vsub.f32 %v773_v21, %v872_v49  ;;  %v396_v34 = vsub.f32 %v794_v31, %v874_v51 }
  0x35   : > { %v366_v4 = vmax.f32 %v362_v0, 0.0  ;;  %v367_v5 = vadd.f32 1e-05, %v363_v1  ;;  %v368_v7 = vadd.f32 1e-05, %v364_v2  ;;  %v390_v9 = vsub.f32 %v770_v20, %v870_v47 }
  0x36   : > { %v369_v6 = vadd.f32 1e-05, %v365_v3  ;;  %v389_v11 = vsub.f32 %v764_v18, %v870_v47  ;;  %v395_v23 = vsub.f32 %v787_v28, %v874_v51  ;;  %v394_v15 = vsub.f32 %v784_v27, %v872_v49 }
  0x37   : > { %v370_v8 = vadd.f32 1e-05, %v366_v4  ;;  %632 = vrsqrt.f32 %v367_v5  ;;  %v398_v20 = vsub.f32 %v838_v57, %v874_v51  ;;  %v393_v18 = vsub.f32 %v781_v26, %v872_v49 }
  0x38   : > { %634 = vrsqrt.f32 %v368_v7  ;;  %v397_v28 = vsub.f32 %v817_v44, %v874_v51 }
  0x39   : > { %636 = vrsqrt.f32 %v369_v6 }
  0x3a   : > { %638 = vrsqrt.f32 %v370_v8 }
  0x44   : > { %v633_v14 = vpop.eup %632 }
  0x45   : > { %v635_v29 = vpop.eup %634  ;;  %v400_v19 = vmul.f32 %v633_v14, %v384_v13  ;;  %v399_v21 = vmul.f32 %v633_v14, %v383_v24  ;;  %v402_v40 = vmul.f32 %v633_v14, %v386_v10  ;;  %v401_v41 = vmul.f32 %v633_v14, %v385_v12 }
  0x46   : > { %v637_v35 = vpop.eup %636  ;;  %v404_v36 = vmul.f32 %v635_v29, %v388_v16  ;;  %v403_v37 = vmul.f32 %v635_v29, %v387_v25  ;;  %v406_v45 = vmul.f32 %v635_v29, %v390_v9  ;;  %v405_v46 = vmul.f32 %v635_v29, %v389_v11 }
  0x47   : > { %v639_v33 = vpop.eup %638  ;;  %v408_v39 = vmul.f32 %v637_v35, %v392_v30  ;;  %v407_v43 = vmul.f32 %v637_v35, %v391_v32  ;;  %v410_v52 = vmul.f32 %v637_v35, %v394_v15  ;;  %v409_v49 = vmul.f32 %v637_v35, %v393_v18 }
  0x48   : > { %v412_v27 = vmul.f32 %v639_v33, %v396_v34  ;;  %v411_v47 = vmul.f32 %v639_v33, %v395_v23  ;;  %v414_v44 = vmul.f32 %v639_v33, %v398_v20  ;;  %v413_v58 = vmul.f32 %v639_v33, %v397_v28 }
  0x89   : > { %v888_v17 = vpop.permute.xlu1 %427  ;;  %v418_v22 = vpop.permute.xlu0 %417 }
  0x8a   : > { %v435_v53 = vmul.f32 %v418_v22, %v399_v21  ;;  %v439_v57 = vmul.f32 %v418_v22, %v403_v37  ;;  %v443_v42 = vmul.f32 %v418_v22, %v407_v43  ;;  %v447_v62 = vmul.f32 %v418_v22, %v411_v47 }
  0x8b   : > { %v437_v7 = vmul.f32 %v888_v17, %v401_v41  ;;  %v441_v6 = vmul.f32 %v888_v17, %v405_v46  ;;  %v445_v24 = vmul.f32 %v888_v17, %v409_v49  ;;  %v449_v10 = vmul.f32 %v888_v17, %v413_v58 }
  0x8d   : > { %v433_v38 = vpop.permute.xlu1 %432  ;;  %v423_v31 = vpop.permute.xlu0 %422 }
  0x8e   : > { %v436_v48 = vmul.f32 %v423_v31, %v400_v19  ;;  %v440_v50 = vmul.f32 %v423_v31, %v404_v36  ;;  %v444_v51 = vmul.f32 %v423_v31, %v408_v39  ;;  %v448_v59 = vmul.f32 %v423_v31, %v412_v27 }
  0x8f   : > { %v438_v0 = vmul.f32 %v433_v38, %v402_v40  ;;  %v442_v1 = vmul.f32 %v433_v38, %v406_v45  ;;  %v446_v13 = vmul.f32 %v433_v38, %v410_v52  ;;  %v450_v22 = vmul.f32 %v433_v38, %v414_v44 }
  0x91   : > { %v459_v54 = vpop.permute.xlu1 %458  ;;  %v454_v26 = vpop.permute.xlu0 %453 }
  0x92   : > { %v472_v55 = vadd.f32 %v459_v54, %v436_v48  ;;  %v476_v56 = vadd.f32 %v459_v54, %v440_v50  ;;  %v471_v60 = vadd.f32 %v454_v26, %v435_v53  ;;  %v475_v61 = vadd.f32 %v454_v26, %v439_v57 }
  0x93   : > { %v480_v63 = vadd.f32 %v459_v54, %v444_v51  ;;  %v484_v2 = vadd.f32 %v459_v54, %v448_v59  ;;  %v479_v3 = vadd.f32 %v454_v26, %v443_v42  ;;  %v483_v8 = vadd.f32 %v454_v26, %v447_v62 }
  0x94   : > { %488 = vst.msk [vmem:[%s923_s12 + $0x8] sm:$0xff] %vm226_vm0, %v472_v55  ;;  %492 = vst.msk [vmem:[%s923_s12 + $0x28] sm:$0xff] %vm226_vm0, %v476_v56 }
  0x95   : > { %487 = vst.msk [vmem:[%s923_s12] sm:$0xff] %vm226_vm0, %v471_v60  ;;  %v469_v4 = vpop.permute.xlu1 %468  ;;  %v464_v5 = vpop.permute.xlu0 %463  ;;  %496 = vst.msk [vmem:[%s923_s12 + $0x48] sm:$0xff] %vm226_vm0, %v480_v63 }
  0x96   : > { %491 = vst.msk [vmem:[%s923_s12 + $0x20] sm:$0xff] %vm226_vm0, %v475_v61  ;;  %v474_v16 = vadd.f32 %v469_v4, %v438_v0  ;;  %v478_v14 = vadd.f32 %v469_v4, %v442_v1  ;;  %500 = vst.msk [vmem:[%s923_s12 + $0x68] sm:$0xff] %vm226_vm0, %v484_v2  ;;  %v473_v25 = vadd.f32 %v464_v5, %v437_v7 }
  0x97   : > { %495 = vst.msk [vmem:[%s923_s12 + $0x40] sm:$0xff] %vm226_vm0, %v479_v3  ;;  %v477_v29 = vadd.f32 %v464_v5, %v441_v6  ;;  %499 = vst.msk [vmem:[%s923_s12 + $0x60] sm:$0xff] %vm226_vm0, %v483_v8  ;;  %v482_v30 = vadd.f32 %v469_v4, %v446_v13  ;;  %v486_v12 = vadd.f32 %v469_v4, %v450_v22 }
  0x98   : > { %490 = vst.msk [vmem:[%s923_s12 + $0x18] sm:$0xff] %vm226_vm0, %v474_v16  ;;  %494 = vst.msk [vmem:[%s923_s12 + $0x38] sm:$0xff] %vm226_vm0, %v478_v14  ;;  %v481_v32 = vadd.f32 %v464_v5, %v445_v24  ;;  %v485_v34 = vadd.f32 %v464_v5, %v449_v10 }
  0x99   : > { %489 = vst.msk [vmem:[%s923_s12 + $0x10] sm:$0xff] %vm226_vm0, %v473_v25  ;;  %498 = vst.msk [vmem:[%s923_s12 + $0x58] sm:$0xff] %vm226_vm0, %v482_v30 }
  0x9a   : > { %493 = vst.msk [vmem:[%s923_s12 + $0x30] sm:$0xff] %vm226_vm0, %v477_v29  ;;  %502 = vst.msk [vmem:[%s923_s12 + $0x78] sm:$0xff] %vm226_vm0, %v486_v12 }
  0x9b   : > { %497 = vst.msk [vmem:[%s923_s12 + $0x50] sm:$0xff] %vm226_vm0, %v481_v32  ;;  %501 = vst.msk [vmem:[%s923_s12 + $0x70] sm:$0xff] %vm226_vm0, %v485_v34 }
  0x9c PF: > { %s13_s14 = sadd.s32 1, %s662_s14   ;;  %s974_s12 = smov %s658_s13 }
  0x9d   : > { %p10_p5 = scmp.ge.s32.totalorder %s13_s14, 4   ;;  %s975_s13 = smov %s977_s15 }
  0x9f   :  { %12 = sbr.rel (!%p10_p5) target bundleno = 2 (0x2), region = 62 }

</bundles_post_ra>
